<compile_context>
chip_gen: v6e
topology: v6e:2x2x1
jax: 0.10.0
libtpu: 0.0.40
codegen_flags: <defaults>
</compile_context>

<pallas_src>
import jax
import jax.numpy as jnp
import numpy as np
from jax.experimental import pallas as pl
from jax.experimental.pallas import tpu as pltpu


def critic_kernel(x_ref, w1_ref, b1_ref, w2_ref, b2_ref, w3_ref, b3_ref, o_ref):
    # One batch tile per grid step; weights/biases are VMEM-resident across steps.
    # bf16 MXU operands, f32 accumulation / bias / ReLU.
    x = x_ref[...].astype(jnp.bfloat16)
    h1 = jnp.dot(x, w1_ref[...], preferred_element_type=jnp.float32) + b1_ref[...]
    h1 = jnp.maximum(h1, 0.0).astype(jnp.bfloat16)
    h2 = jnp.dot(h1, w2_ref[...], preferred_element_type=jnp.float32) + b2_ref[...]
    h2 = jnp.maximum(h2, 0.0).astype(jnp.bfloat16)
    out = jnp.dot(h2, w3_ref[...], preferred_element_type=jnp.float32) + b3_ref[...]
    o_ref[...] = out.astype(o_ref.dtype)


def critic_forward(x, params, *, tb=256):
    """x: [B, state_size] float32. params: dict of w1,b1,w2,b2,w3,b3 (f32).

    tb: batch tile size. Prefer a multiple of 128 (128 on v5e, 256 on v6e/v7x).
    """
    B, S = x.shape
    H = params["w1"].shape[1]
    V = params["w3"].shape[1]

    # Cast weights once (outside the kernel) to the MXU-native bf16; biases stay f32.
    w1 = params["w1"].astype(jnp.bfloat16)
    w2 = params["w2"].astype(jnp.bfloat16)
    w3 = params["w3"].astype(jnp.bfloat16)
    b1 = params["b1"].astype(jnp.float32)
    b2 = params["b2"].astype(jnp.float32)
    b3 = params["b3"].astype(jnp.float32)

    # Pad batch up to a multiple of the tile; padded rows are zeros and are dropped.
    num_tiles = pl.cdiv(max(B, 1), tb)
    Bp = num_tiles * tb
    if Bp != B:
        x = jnp.pad(x, ((0, Bp - B), (0, 0)))

    const2 = lambda i: (0, 0)  # weights / biases: same (full) block every step
    in_specs = [
        pl.BlockSpec((tb, S), lambda i: (i, 0)),   # x tile, pipelined over batch
        pl.BlockSpec(w1.shape, const2),
        pl.BlockSpec(b1.shape, const2),
        pl.BlockSpec(w2.shape, const2),
        pl.BlockSpec(b2.shape, const2),
        pl.BlockSpec(w3.shape, const2),
        pl.BlockSpec(b3.shape, const2),
    ]
    out_spec = pl.BlockSpec((tb, V), lambda i: (i, 0))

    # Advisory cost for XLA's scheduler.
    flops = 2 * Bp * (S * H + H * H + H * V)
    bytes_accessed = (
        x.size * x.dtype.itemsize
        + sum(a.size * a.dtype.itemsize for a in (w1, b1, w2, b2, w3, b3))
        + Bp * V * 4
    )
    cost = pl.CostEstimate(flops=flops, transcendentals=0,
                           bytes_accessed=bytes_accessed)

    # VMEM budget: resident weights + double-buffered x/out tiles + f32/bf16 temporaries.
    weight_bytes = sum(a.size * a.dtype.itemsize for a in (w1, b1, w2, b2, w3, b3))
    tile_bytes = 2 * (tb * S * 4 + tb * V * 4)   # 2-deep pipelined input/output tiles
    temp_bytes = 4 * tb * H * 4                  # h1/h2 in f32 + bf16 copies (headroom)
    vmem_limit = min(int(1.5 * (weight_bytes + tile_bytes + temp_bytes)) + (8 << 20),
                     96 << 20)

    out = pl.pallas_call(
        critic_kernel,
        out_shape=jax.ShapeDtypeStruct((Bp, V), jnp.float32),
        grid=(num_tiles,),
        in_specs=in_specs,
        out_specs=out_spec,
        compiler_params=pltpu.CompilerParams(
            dimension_semantics=("parallel",),   # shard batch grid across v7x's 2 TCs
            vmem_limit_bytes=vmem_limit,
        ),
        cost_estimate=cost,
    )(x, w1, b1, w2, b2, w3, b3)

    return out[:B]


def init_critic_params(key, state_size, value_size, hidden_size=256):
    """Deterministic init mimicking nn.Linear default: U(-1/sqrt(fan_in), 1/sqrt(fan_in))."""
    ks = jax.random.split(key, 6)

    def linear(kw, kb, fan_in, fan_out):
        bound = 1.0 / np.sqrt(fan_in)
        w = jax.random.uniform(kw, (fan_in, fan_out), jnp.float32, -bound, bound)
        b = jax.random.uniform(kb, (1, fan_out), jnp.float32, -bound, bound)
        return w, b

    w1, b1 = linear(ks[0], ks[1], state_size, hidden_size)
    w2, b2 = linear(ks[2], ks[3], hidden_size, hidden_size)
    w3, b3 = linear(ks[4], ks[5], hidden_size, value_size)
    return {"w1": w1, "b1": b1, "w2": w2, "b2": b2, "w3": w3, "b3": b3}


def critic_ref(x, p):
    """Pure-JAX reference using the same bf16-operand / f32-accumulate recipe."""
    bf = jnp.bfloat16
    h1 = jnp.maximum(jnp.dot(x.astype(bf), p["w1"].astype(bf),
                             preferred_element_type=jnp.float32) + p["b1"], 0.0)
    h2 = jnp.maximum(jnp.dot(h1.astype(bf), p["w2"].astype(bf),
                             preferred_element_type=jnp.float32) + p["b2"], 0.0)
    return jnp.dot(h2.astype(bf), p["w3"].astype(bf),
                   preferred_element_type=jnp.float32) + p["b3"]


if __name__ == "__main__":
    key = jax.random.PRNGKey(0)
    k_param, k_x = jax.random.split(key)

    batch = 8
    state_size = 16
    value_size = 4
    hidden_size = 32  # small for the demo; module default (256) is lane-aligned already

    params = init_critic_params(k_param, state_size, value_size, hidden_size)
    x = jax.random.normal(k_x, (batch, state_size), jnp.float32)

    out = critic_forward(x, params, tb=128)
    out = jax.block_until_ready(out)
    assert out.shape == (batch, value_size)

    ref = critic_ref(x, params)
    np.testing.assert_allclose(np.asarray(out), np.asarray(ref), rtol=2e-2, atol=2e-2)

    print("KERNEL_OK")
</pallas_src>

<mosaic_0001>
module attributes {stable_mosaic.version = 11 : i64} {
  func.func @critic_kernel(%arg0: i32, %arg1: memref<128x16xf32, #tpu.memory_space<vmem>>, %arg2: memref<16x32xbf16, #tpu.memory_space<vmem>>, %arg3: memref<1x32xf32, #tpu.memory_space<vmem>>, %arg4: memref<32x32xbf16, #tpu.memory_space<vmem>>, %arg5: memref<1x32xf32, #tpu.memory_space<vmem>>, %arg6: memref<32x4xbf16, #tpu.memory_space<vmem>>, %arg7: memref<1x4xf32, #tpu.memory_space<vmem>>, %arg8: memref<128x4xf32, #tpu.memory_space<vmem>>) attributes {dimension_semantics = [#tpu.dimension_semantics<parallel>], iteration_bounds = array<i64: 1>, scalar_prefetch = 0 : i64, scratch_operands = 0 : i64, tpu.core_type = #tpu.core_type<tc>, window_params = [{transform_indices = @transform_0, window_bounds = array<i64: 128, 16>}, {pipeline_mode = #tpu.pipeline_mode<synchronous>, transform_indices = @transform_1, window_bounds = array<i64: 16, 32>}, {pipeline_mode = #tpu.pipeline_mode<synchronous>, transform_indices = @transform_2, window_bounds = array<i64: 1, 32>}, {pipeline_mode = #tpu.pipeline_mode<synchronous>, transform_indices = @transform_3, window_bounds = array<i64: 32, 32>}, {pipeline_mode = #tpu.pipeline_mode<synchronous>, transform_indices = @transform_4, window_bounds = array<i64: 1, 32>}, {pipeline_mode = #tpu.pipeline_mode<synchronous>, transform_indices = @transform_5, window_bounds = array<i64: 32, 4>}, {pipeline_mode = #tpu.pipeline_mode<synchronous>, transform_indices = @transform_6, window_bounds = array<i64: 1, 4>}, {transform_indices = @transform_7, window_bounds = array<i64: 128, 4>}]} {
    %c0 = arith.constant 0 : index
    %c0_0 = arith.constant 0 : index
    %0 = vector.load %arg1[%c0, %c0_0] : memref<128x16xf32, #tpu.memory_space<vmem>>, vector<128x16xf32>
    %1 = arith.truncf %0 : vector<128x16xf32> to vector<128x16xbf16>
    %c0_1 = arith.constant 0 : index
    %c0_2 = arith.constant 0 : index
    %2 = vector.load %arg2[%c0_1, %c0_2] : memref<16x32xbf16, #tpu.memory_space<vmem>>, vector<16x32xbf16>
    %cst = arith.constant dense<0.000000e+00> : vector<128x32xf32>
    %3 = tpu.matmul %1, %2, %cst {dimension_numbers = #tpu.dot_dimension_numbers<[1], [0], [0], [1], [0, 0, 1, 1], [], []>} : vector<128x16xbf16>, vector<16x32xbf16>, vector<128x32xf32> -> vector<128x32xf32>
    %c0_3 = arith.constant 0 : index
    %c0_4 = arith.constant 0 : index
    %4 = vector.load %arg3[%c0_3, %c0_4] : memref<1x32xf32, #tpu.memory_space<vmem>>, vector<1x32xf32>
    %5 = vector.broadcast %4 : vector<1x32xf32> to vector<128x32xf32>
    %6 = arith.addf %3, %5 : vector<128x32xf32>
    %cst_5 = arith.constant 0.000000e+00 : f32
    %7 = vector.broadcast %cst_5 : f32 to vector<128x32xf32>
    %8 = arith.maximumf %6, %7 : vector<128x32xf32>
    %9 = arith.truncf %8 : vector<128x32xf32> to vector<128x32xbf16>
    %c0_6 = arith.constant 0 : index
    %c0_7 = arith.constant 0 : index
    %10 = vector.load %arg4[%c0_6, %c0_7] : memref<32x32xbf16, #tpu.memory_space<vmem>>, vector<32x32xbf16>
    %cst_8 = arith.constant dense<0.000000e+00> : vector<128x32xf32>
    %11 = tpu.matmul %9, %10, %cst_8 {dimension_numbers = #tpu.dot_dimension_numbers<[1], [0], [0], [1], [0, 0, 1, 1], [], []>} : vector<128x32xbf16>, vector<32x32xbf16>, vector<128x32xf32> -> vector<128x32xf32>
    %c0_9 = arith.constant 0 : index
    %c0_10 = arith.constant 0 : index
    %12 = vector.load %arg5[%c0_9, %c0_10] : memref<1x32xf32, #tpu.memory_space<vmem>>, vector<1x32xf32>
    %13 = vector.broadcast %12 : vector<1x32xf32> to vector<128x32xf32>
    %14 = arith.addf %11, %13 : vector<128x32xf32>
    %cst_11 = arith.constant 0.000000e+00 : f32
    %15 = vector.broadcast %cst_11 : f32 to vector<128x32xf32>
    %16 = arith.maximumf %14, %15 : vector<128x32xf32>
    %17 = arith.truncf %16 : vector<128x32xf32> to vector<128x32xbf16>
    %c0_12 = arith.constant 0 : index
    %c0_13 = arith.constant 0 : index
    %18 = vector.load %arg6[%c0_12, %c0_13] : memref<32x4xbf16, #tpu.memory_space<vmem>>, vector<32x4xbf16>
    %cst_14 = arith.constant dense<0.000000e+00> : vector<128x4xf32>
    %19 = tpu.matmul %17, %18, %cst_14 {dimension_numbers = #tpu.dot_dimension_numbers<[1], [0], [0], [1], [0, 0, 1, 1], [], []>} : vector<128x32xbf16>, vector<32x4xbf16>, vector<128x4xf32> -> vector<128x4xf32>
    %c0_15 = arith.constant 0 : index
    %c0_16 = arith.constant 0 : index
    %20 = vector.load %arg7[%c0_15, %c0_16] : memref<1x4xf32, #tpu.memory_space<vmem>>, vector<1x4xf32>
    %21 = vector.broadcast %20 : vector<1x4xf32> to vector<128x4xf32>
    %22 = arith.addf %19, %21 : vector<128x4xf32>
    %c0_17 = arith.constant 0 : index
    %c0_18 = arith.constant 0 : index
    %23 = vector.load %arg8[%c0_17, %c0_18] : memref<128x4xf32, #tpu.memory_space<vmem>>, vector<128x4xf32>
    tpu.vector_store %arg8[%c0_17, %c0_18], %22 {strides = array<i32>} : memref<128x4xf32, #tpu.memory_space<vmem>>, vector<128x4xf32>,
    return
  }
  func.func @transform_0(%arg0: i32) -> (i32, i32) {
    %c0_i32 = arith.constant 0 : i32
    %c0_i32_0 = arith.constant 0 : i32
    return %arg0, %c0_i32 : i32, i32
  }
  func.func @transform_1(%arg0: i32) -> (i32, i32) {
    %c0_i32 = arith.constant 0 : i32
    %c0_i32_0 = arith.constant 0 : i32
    %c0_i32_1 = arith.constant 0 : i32
    return %c0_i32, %c0_i32_0 : i32, i32
  }
  func.func @transform_2(%arg0: i32) -> (i32, i32) {
    %c0_i32 = arith.constant 0 : i32
    %c0_i32_0 = arith.constant 0 : i32
    %c0_i32_1 = arith.constant 0 : i32
    return %c0_i32, %c0_i32_0 : i32, i32
  }
  func.func @transform_3(%arg0: i32) -> (i32, i32) {
    %c0_i32 = arith.constant 0 : i32
    %c0_i32_0 = arith.constant 0 : i32
    %c0_i32_1 = arith.constant 0 : i32
    return %c0_i32, %c0_i32_0 : i32, i32
  }
  func.func @transform_4(%arg0: i32) -> (i32, i32) {
    %c0_i32 = arith.constant 0 : i32
    %c0_i32_0 = arith.constant 0 : i32
    %c0_i32_1 = arith.constant 0 : i32
    return %c0_i32, %c0_i32_0 : i32, i32
  }
  func.func @transform_5(%arg0: i32) -> (i32, i32) {
    %c0_i32 = arith.constant 0 : i32
    %c0_i32_0 = arith.constant 0 : i32
    %c0_i32_1 = arith.constant 0 : i32
    return %c0_i32, %c0_i32_0 : i32, i32
  }
  func.func @transform_6(%arg0: i32) -> (i32, i32) {
    %c0_i32 = arith.constant 0 : i32
    %c0_i32_0 = arith.constant 0 : i32
    %c0_i32_1 = arith.constant 0 : i32
    return %c0_i32, %c0_i32_0 : i32, i32
  }
  func.func @transform_7(%arg0: i32) -> (i32, i32) {
    %c0_i32 = arith.constant 0 : i32
    %c0_i32_0 = arith.constant 0 : i32
    return %arg0, %c0_i32 : i32, i32
  }
}

</mosaic_0001>

<bundles_post_ra>
// kernel: tpu_custom_call.1
= control target key start
LH: loop header
LB: loop body
LE: loop exit
PB: predicated region body
PF: predicated region fallthrough
CT: control target
= control target key end

     0   :  { %vm66_vm0 = vcmask 130048   ;;  %vm235_vm1 = vcmask 261120   ;;  %vm525_vm2 = vcmask 31744   ;;  %s872_s1 = inlined_call_operand.vmem [shape: bf16[16,32], index: 1, kind: input, shape index: {}]   ;;  %s873_s0 = inlined_call_operand.vmem [shape: f32[128,16], index: 0, kind: input, shape index: {}]   ;;  %s874_s3 = inlined_call_operand.vmem [shape: bf16[32,32], index: 3, kind: input, shape index: {}]   ;;  %s875_s5 = inlined_call_operand.vmem [shape: bf16[32,4], index: 5, kind: input, shape index: {}]   ;;  %s876_s2 = inlined_call_operand.vmem [shape: f32[1,32], index: 2, kind: input, shape index: {}]   ;;  %s877_s4 = inlined_call_operand.vmem [shape: f32[1,32], index: 4, kind: input, shape index: {}]   ;;  %s878_s6 = inlined_call_operand.vmem [shape: f32[1,4], index: 6, kind: input, shape index: {}]   ;;  %s879_s7 = inlined_call_operand.vmem [shape: f32[128,4], index: 7, kind: output, shape index: {}]  }
   0x1   :  { %v667_v0 = vld [vmem:[%s872_s1] sm:$0xff]   ;;  %v28_v2 = vld [vmem:[%s873_s0 + $0x8] sm:$0xff]  ;;  %v29_v3 = vld [vmem:[%s873_s0 + $0x10] sm:$0xff] }
   0x2   :  { %v27_v1 = vld [vmem:[%s873_s0] sm:$0xff]  ;;  %607 = vmatprep.subr.bf16.mxu0 %v667_v0  ;;  %v30_v5 = vld [vmem:[%s873_s0 + $0x18] sm:$0xff]  ;;  %665 = vmatprep.subr.bf16.mxu1 %v667_v0  ;;  %v32_v7 = vld [vmem:[%s873_s0 + $0x28] sm:$0xff] }
   0x3   :  { %v43_v4 = vpack.c.bf16 %v28_v2, %v27_v1  ;;  %v31_v6 = vld [vmem:[%s873_s0 + $0x20] sm:$0xff]  ;;  %608 = vmatpush3.bf16.msra.mxu0 %v667_v0  ;;  %v44_v8 = vpack.c.bf16 %v30_v5, %v29_v3  ;;  %666 = vmatpush3.bf16.msra.mxu1 %v667_v0  ;;  %v36_v11 = vld [vmem:[%s873_s0 + $0x48] sm:$0xff]  ;;  %v37_v12 = vld [vmem:[%s873_s0 + $0x50] sm:$0xff] }
   0x4   :  { %v45_v9 = vpack.c.bf16 %v32_v7, %v31_v6  ;;  %v35_v10 = vld [vmem:[%s873_s0 + $0x40] sm:$0xff]  ;;  %v38_v13 = vld [vmem:[%s873_s0 + $0x58] sm:$0xff]  ;;  %v33_v14 = vld [vmem:[%s873_s0 + $0x30] sm:$0xff] }
   0x5   :  { %609 = vmatprep.mubr.msk.bf16.mxu0 %vm66_vm0, %v43_v4  ;;  %v47_v15 = vpack.c.bf16 %v36_v11, %v35_v10  ;;  %v48_v16 = vpack.c.bf16 %v38_v13, %v37_v12  ;;  %v39_v17 = vld [vmem:[%s873_s0 + $0x60] sm:$0xff]  ;;  %v40_v18 = vld [vmem:[%s873_s0 + $0x68] sm:$0xff]  ;;  %v34_v19 = vld [vmem:[%s873_s0 + $0x38] sm:$0xff] }
   0x6   :  { %610 = vmatmul.mubr.msk.bf16.vlgmr.msra.gmra.mxu0 %vm66_vm0, %v44_v8  ;;  %v49_v20 = vpack.c.bf16 %v40_v18, %v39_v17  ;;  %v668_v21 = vld [vmem:[%s874_s3 + $0x8] sm:$0xff]   ;;  %v41_v22 = vld [vmem:[%s873_s0 + $0x70] sm:$0xff]  ;;  %v42_v23 = vld [vmem:[%s873_s0 + $0x78] sm:$0xff]  ;;  %v46_v24 = vpack.c.bf16 %v34_v19, %v33_v14 }
   0x7   :  { %613 = vmatprep.mubr.msk.bf16.mxu0 %vm66_vm0, %v45_v9  ;;  %617 = vmatprep.mubr.msk.bf16.mxu1 %vm66_vm0, %v47_v15  ;;  %v50_v25 = vpack.c.bf16 %v42_v23, %v41_v22  ;;  %v669_v26 = vld [vmem:[%s874_s3] sm:$0xff]   ;;  %v670_v27 = vld [vmem:[%s875_s5 + $0x8] sm:$0xff]  }
   0x8   :  { %618 = vmatmul.mubr.msk.bf16.vlgmr.msra.gmra.mxu1 %vm66_vm0, %v48_v16  ;;  %625 = vmatprep.subr.bf16.mxu1 %v668_v21  ;;  %v546_v31 = vld [vmem:[%s876_s2] ss:$0 sm:$0xff] }
   0x9   :  { %621 = vmatprep.mubr.msk.bf16.mxu1 %vm66_vm0, %v49_v20  ;;  %626 = vmatpush3.bf16.msra.mxu1 %v668_v21  ;;  %v671_v21 = vld [vmem:[%s875_s5] sm:$0xff]  }
   0xa   :  { %627 = vmatprep.subr.bf16.mxu1 %v669_v26  ;;  %645 = vmatprep.subr.bf16.mxu0 %v670_v27 }
   0xb   :  { %646 = vmatpush3.bf16.msra.mxu0 %v670_v27 }
   0xc   :  { %647 = vmatprep.subr.bf16.mxu0 %v671_v21 }
   0xd   :  { %628 = vmatpush3.bf16.msra.mxu1 %v669_v26 }
   0xe   :  { %614 = vmatmul.mubr.msk.bf16.gmra.mxu0 %vm66_vm0, %v46_v24  ;;  %v556_v24 = vld [vmem:[%s877_s4] ss:$0 sm:$0xff] }
   0xf   :  { %648 = vmatpush3.bf16.msra.mxu0 %v671_v21 }
  0x10   :  { %622 = vmatmul.mubr.msk.bf16.gmra.mxu1 %vm66_vm0, %v50_v25 }
  0xc6   :  { %v611_v28 = vpop.f32.mrf.mxu0 }
  0xc7   :  { %v134_v36 = vadd.f32 %v611_v28, %v546_v31 }
  0xc8   :  { %v125_v29 = vpop.f32.mrf.mxu0  ;;  %v619_v30 = vpop.f32.mrf.mxu1 }
  0xc9   :  { %v126_v34 = vadd.f32 %v546_v31, %v125_v29  ;;  %v190_v45 = vmax.f32 %v134_v36, 0.0  ;;  %v166_v7 = vadd.f32 %v619_v30, %v546_v31 }
  0xca   :  { %v612_v32 = vpop.f32.mrf.mxu0  ;;  %v157_v33 = vpop.f32.mrf.mxu1 }
  0xcb   :  { %v137_v35 = vadd.f32 %v612_v32, %v546_v31  ;;  %v188_v43 = vmax.f32 %v126_v34, 0.0  ;;  %v158_v49 = vadd.f32 %v546_v31, %v157_v33  ;;  %v198_v12 = vmax.f32 %v166_v7, 0.0 }
  0xcc   :  { %v128_v37 = vpop.f32.mrf.mxu0  ;;  %v620_v38 = vpop.f32.mrf.mxu1 }
  0xcd   :  { %v129_v39 = vadd.f32 %v546_v31, %v128_v37  ;;  %v191_v40 = vmax.f32 %v137_v35, 0.0  ;;  %v196_v59 = vmax.f32 %v158_v49, 0.0  ;;  %v169_v9 = vadd.f32 %v620_v38, %v546_v31 }
  0xce   :  { %v615_v41 = vpop.f32.mrf.mxu0  ;;  %v160_v42 = vpop.f32.mrf.mxu1 }
  0xcf   :  { %v189_v44 = vmax.f32 %v129_v39, 0.0  ;;  %v161_v50 = vadd.f32 %v546_v31, %v160_v42  ;;  %v205_v51 = vpack.c.bf16 %v191_v40, %v190_v45  ;;  %v150_v56 = vadd.f32 %v615_v41, %v546_v31 }
  0xd0   :  { %v141_v46 = vpop.f32.mrf.mxu0  ;;  %v623_v47 = vpop.f32.mrf.mxu1  ;;  %v199_v13 = vmax.f32 %v169_v9, 0.0 }
  0xd1   :  { %v204_v48 = vpack.c.bf16 %v189_v44, %v188_v43  ;;  %v142_v54 = vadd.f32 %v546_v31, %v141_v46  ;;  %v197_v61 = vmax.f32 %v161_v50, 0.0  ;;  %v194_v2 = vmax.f32 %v150_v56, 0.0 }
  0xd2   :  { %v616_v52 = vpop.f32.mrf.mxu0  ;;  %v173_v53 = vpop.f32.mrf.mxu1  ;;  %v209_v15 = vpack.c.bf16 %v199_v13, %v198_v12  ;;  %v182_v16 = vadd.f32 %v623_v47, %v546_v31 }
  0xd3   :  { %v153_v55 = vadd.f32 %v616_v52, %v546_v31  ;;  %629 = vmatprep.mubr.msk.bf16.mxu1 %vm235_vm1, %v204_v48  ;;  %v192_v0 = vmax.f32 %v142_v54, 0.0  ;;  %v208_v4 = vpack.c.bf16 %v197_v61, %v196_v59  ;;  %v174_v5 = vadd.f32 %v546_v31, %v173_v53 }
  0xd4   :  { %v144_v57 = vpop.f32.mrf.mxu0  ;;  %630 = vmatmul.mubr.msk.bf16.vlgmr.msra.gmra.mxu1 %vm235_vm1, %v205_v51  ;;  %v624_v58 = vpop.f32.mrf.mxu1  ;;  %v202_v18 = vmax.f32 %v182_v16, 0.0 }
  0xd5   :  { %v145_v60 = vadd.f32 %v546_v31, %v144_v57  ;;  %v195_v62 = vmax.f32 %v153_v55, 0.0  ;;  %v200_v10 = vmax.f32 %v174_v5, 0.0  ;;  %v185_v17 = vadd.f32 %v624_v58, %v546_v31 }
  0xd6   :  { %v176_v63 = vpop.f32.mrf.mxu1 }
  0xd7   :  { %v193_v1 = vmax.f32 %v145_v60, 0.0  ;;  %v177_v6 = vadd.f32 %v546_v31, %v176_v63  ;;  %v207_v8 = vpack.c.bf16 %v195_v62, %v194_v2  ;;  %v203_v19 = vmax.f32 %v185_v17, 0.0 }
  0xd9   :  { %v206_v3 = vpack.c.bf16 %v193_v1, %v192_v0  ;;  %v201_v11 = vmax.f32 %v177_v6, 0.0  ;;  %v211_v20 = vpack.c.bf16 %v203_v19, %v202_v18 }
  0xdb   :  { %633 = vmatprep.mubr.msk.bf16.mxu1 %vm235_vm1, %v206_v3  ;;  %v210_v14 = vpack.c.bf16 %v201_v11, %v200_v10 }
  0xdc   :  { %634 = vmatmul.mubr.msk.bf16.gmra.mxu1 %vm235_vm1, %v207_v8 }
  0xdd   :  { %637 = vmatprep.mubr.msk.bf16.mxu1 %vm235_vm1, %v208_v4 }
  0xe4   :  { %638 = vmatmul.mubr.msk.bf16.gmra.mxu1 %vm235_vm1, %v209_v15  ;;  %v567_v15 = vld [vmem:[%s878_s6] ss:$0 sm:$0xff] }
  0xe5   :  { %641 = vmatprep.mubr.msk.bf16.mxu1 %vm235_vm1, %v210_v14 }
  0xec   :  { %642 = vmatmul.mubr.msk.bf16.gmra.mxu1 %vm235_vm1, %v211_v20 }
 0x194   :  { %v631_v22 = vpop.f32.mrf.mxu1 }
 0x195   :  { %v303_v28 = vadd.f32 %v631_v22, %v556_v24 }
 0x196   :  { %v294_v23 = vpop.f32.mrf.mxu1 }
 0x197   :  { %v295_v26 = vadd.f32 %v556_v24, %v294_v23  ;;  %v359_v35 = vmax.f32 %v303_v28, 0.0 }
 0x198   :  { %v632_v25 = vpop.f32.mrf.mxu1 }
 0x199   :  { %v306_v27 = vadd.f32 %v632_v25, %v556_v24  ;;  %v357_v33 = vmax.f32 %v295_v26, 0.0 }
 0x19a   :  { %v297_v29 = vpop.f32.mrf.mxu1 }
 0x19b   :  { %v298_v30 = vadd.f32 %v556_v24, %v297_v29  ;;  %v360_v31 = vmax.f32 %v306_v27, 0.0 }
 0x19c   :  { %v635_v32 = vpop.f32.mrf.mxu1 }
 0x19d   :  { %v358_v34 = vmax.f32 %v298_v30, 0.0  ;;  %v374_v38 = vpack.c.bf16 %v360_v31, %v359_v35  ;;  %v319_v42 = vadd.f32 %v635_v32, %v556_v24 }
 0x19e   :  { %v310_v36 = vpop.f32.mrf.mxu1 }
 0x19f   :  { %v373_v37 = vpack.c.bf16 %v358_v34, %v357_v33  ;;  %v311_v40 = vadd.f32 %v556_v24, %v310_v36  ;;  %v363_v49 = vmax.f32 %v319_v42, 0.0 }
 0x1a0   :  { %v636_v39 = vpop.f32.mrf.mxu1 }
 0x1a1   :  { %v322_v41 = vadd.f32 %v636_v39, %v556_v24  ;;  %649 = vmatprep.mubr.msk.bf16.mxu0 %vm235_vm1, %v373_v37  ;;  %v361_v47 = vmax.f32 %v311_v40, 0.0 }
 0x1a2   :  { %v313_v43 = vpop.f32.mrf.mxu1  ;;  %650 = vmatmul.mubr.msk.bf16.vlgmr.msra.gmra.mxu0 %vm235_vm1, %v374_v38 }
 0x1a3   :  { %v314_v44 = vadd.f32 %v556_v24, %v313_v43  ;;  %v364_v45 = vmax.f32 %v322_v41, 0.0 }
 0x1a4   :  { %v639_v46 = vpop.f32.mrf.mxu1 }
 0x1a5   :  { %v362_v48 = vmax.f32 %v314_v44, 0.0  ;;  %v376_v52 = vpack.c.bf16 %v364_v45, %v363_v49  ;;  %v335_v56 = vadd.f32 %v639_v46, %v556_v24 }
 0x1a6   :  { %v326_v50 = vpop.f32.mrf.mxu1 }
 0x1a7   :  { %v375_v51 = vpack.c.bf16 %v362_v48, %v361_v47  ;;  %v327_v54 = vadd.f32 %v556_v24, %v326_v50  ;;  %v367_v63 = vmax.f32 %v335_v56, 0.0 }
 0x1a8   :  { %v640_v53 = vpop.f32.mrf.mxu1 }
 0x1a9   :  { %v338_v55 = vadd.f32 %v640_v53, %v556_v24  ;;  %653 = vmatprep.mubr.msk.bf16.mxu0 %vm235_vm1, %v375_v51  ;;  %v365_v61 = vmax.f32 %v327_v54, 0.0 }
 0x1aa   :  { %v329_v57 = vpop.f32.mrf.mxu1  ;;  %654 = vmatmul.mubr.msk.bf16.gmra.mxu0 %vm235_vm1, %v376_v52 }
 0x1ab   :  { %v330_v58 = vadd.f32 %v556_v24, %v329_v57  ;;  %v368_v59 = vmax.f32 %v338_v55, 0.0 }
 0x1ac   :  { %v643_v60 = vpop.f32.mrf.mxu1 }
 0x1ad   :  { %v366_v62 = vmax.f32 %v330_v58, 0.0  ;;  %v378_v2 = vpack.c.bf16 %v368_v59, %v367_v63  ;;  %v351_v6 = vadd.f32 %v643_v60, %v556_v24 }
 0x1ae   :  { %v342_v0 = vpop.f32.mrf.mxu1 }
 0x1af   :  { %v377_v1 = vpack.c.bf16 %v366_v62, %v365_v61  ;;  %v343_v4 = vadd.f32 %v556_v24, %v342_v0  ;;  %v371_v12 = vmax.f32 %v351_v6, 0.0 }
 0x1b0   :  { %v644_v3 = vpop.f32.mrf.mxu1 }
 0x1b1   :  { %v354_v5 = vadd.f32 %v644_v3, %v556_v24  ;;  %657 = vmatprep.mubr.msk.bf16.mxu0 %vm235_vm1, %v377_v1  ;;  %v369_v10 = vmax.f32 %v343_v4, 0.0 }
 0x1b2   :  { %v345_v7 = vpop.f32.mrf.mxu1  ;;  %658 = vmatmul.mubr.msk.bf16.gmra.mxu0 %vm235_vm1, %v378_v2 }
 0x1b3   :  { %v346_v8 = vadd.f32 %v556_v24, %v345_v7  ;;  %v372_v9 = vmax.f32 %v354_v5, 0.0 }
 0x1b5   :  { %v370_v11 = vmax.f32 %v346_v8, 0.0  ;;  %v380_v14 = vpack.c.bf16 %v372_v9, %v371_v12 }
 0x1b7   :  { %v379_v13 = vpack.c.bf16 %v370_v11, %v369_v10 }
 0x1b9   :  { %661 = vmatprep.mubr.msk.bf16.mxu0 %vm235_vm1, %v379_v13 }
 0x1ba   :  { %662 = vmatmul.mubr.msk.bf16.gmra.mxu0 %vm235_vm1, %v380_v14 }
 0x262   :  { %v651_v16 = vpop.f32.mrf.mxu0 }
 0x263   :  { %v471_v17 = vadd.f32 %v651_v16, %v567_v15 }
 0x264   :  { %v462_v18 = vpop.f32.mrf.mxu0 }
 0x265   :  { %528 = vst.msk [vmem:[%s879_s7 + $0x10] sm:$0xff] %vm525_vm2, %v471_v17  ;;  %v463_v19 = vadd.f32 %v567_v15, %v462_v18 }
 0x266   :  { %v652_v20 = vpop.f32.mrf.mxu0 }
 0x267   :  { %526 = vst.msk [vmem:[%s879_s7] sm:$0xff] %vm525_vm2, %v463_v19  ;;  %v474_v21 = vadd.f32 %v652_v20, %v567_v15 }
 0x268   :  { %v465_v22 = vpop.f32.mrf.mxu0 }
 0x269   :  { %529 = vst.msk [vmem:[%s879_s7 + $0x18] sm:$0xff] %vm525_vm2, %v474_v21  ;;  %v466_v23 = vadd.f32 %v567_v15, %v465_v22 }
 0x26a   :  { %v655_v24 = vpop.f32.mrf.mxu0 }
 0x26b   :  { %527 = vst.msk [vmem:[%s879_s7 + $0x8] sm:$0xff] %vm525_vm2, %v466_v23  ;;  %v487_v25 = vadd.f32 %v655_v24, %v567_v15 }
 0x26c   :  { %v478_v26 = vpop.f32.mrf.mxu0 }
 0x26d   :  { %532 = vst.msk [vmem:[%s879_s7 + $0x30] sm:$0xff] %vm525_vm2, %v487_v25  ;;  %v479_v27 = vadd.f32 %v567_v15, %v478_v26 }
 0x26e   :  { %v656_v28 = vpop.f32.mrf.mxu0 }
 0x26f   :  { %530 = vst.msk [vmem:[%s879_s7 + $0x20] sm:$0xff] %vm525_vm2, %v479_v27  ;;  %v490_v29 = vadd.f32 %v656_v28, %v567_v15 }
 0x270   :  { %v481_v30 = vpop.f32.mrf.mxu0 }
 0x271   :  { %533 = vst.msk [vmem:[%s879_s7 + $0x38] sm:$0xff] %vm525_vm2, %v490_v29  ;;  %v482_v31 = vadd.f32 %v567_v15, %v481_v30 }
 0x272   :  { %v659_v32 = vpop.f32.mrf.mxu0 }
 0x273   :  { %531 = vst.msk [vmem:[%s879_s7 + $0x28] sm:$0xff] %vm525_vm2, %v482_v31  ;;  %v503_v33 = vadd.f32 %v659_v32, %v567_v15 }
 0x274   :  { %v494_v34 = vpop.f32.mrf.mxu0 }
 0x275   :  { %536 = vst.msk [vmem:[%s879_s7 + $0x50] sm:$0xff] %vm525_vm2, %v503_v33  ;;  %v495_v35 = vadd.f32 %v567_v15, %v494_v34 }
 0x276   :  { %v660_v36 = vpop.f32.mrf.mxu0 }
 0x277   :  { %534 = vst.msk [vmem:[%s879_s7 + $0x40] sm:$0xff] %vm525_vm2, %v495_v35  ;;  %v506_v37 = vadd.f32 %v660_v36, %v567_v15 }
 0x278   :  { %v497_v38 = vpop.f32.mrf.mxu0 }
 0x279   :  { %537 = vst.msk [vmem:[%s879_s7 + $0x58] sm:$0xff] %vm525_vm2, %v506_v37  ;;  %v498_v39 = vadd.f32 %v567_v15, %v497_v38 }
 0x27a   :  { %v663_v40 = vpop.f32.mrf.mxu0 }
 0x27b   :  { %535 = vst.msk [vmem:[%s879_s7 + $0x48] sm:$0xff] %vm525_vm2, %v498_v39  ;;  %v519_v41 = vadd.f32 %v663_v40, %v567_v15 }
 0x27c   :  { %v510_v42 = vpop.f32.mrf.mxu0 }
 0x27d   :  { %540 = vst.msk [vmem:[%s879_s7 + $0x70] sm:$0xff] %vm525_vm2, %v519_v41  ;;  %v511_v43 = vadd.f32 %v567_v15, %v510_v42 }
 0x27e   :  { %v664_v44 = vpop.f32.mrf.mxu0 }
 0x27f   :  { %538 = vst.msk [vmem:[%s879_s7 + $0x60] sm:$0xff] %vm525_vm2, %v511_v43  ;;  %v522_v45 = vadd.f32 %v664_v44, %v567_v15 }
 0x280   :  { %v513_v46 = vpop.f32.mrf.mxu0 }
 0x281   :  { %541 = vst.msk [vmem:[%s879_s7 + $0x78] sm:$0xff] %vm525_vm2, %v522_v45  ;;  %v514_v47 = vadd.f32 %v567_v15, %v513_v46 }
 0x283   :  { %539 = vst.msk [vmem:[%s879_s7 + $0x68] sm:$0xff] %vm525_vm2, %v514_v47 }

</bundles_post_ra>
